<compile_context>
chip_gen: v7x
topology: tpu7x:2x2x1
jax: 0.10.0
libtpu: 0.0.40
codegen_flags: <defaults>
</compile_context>

<pallas_src>
import functools

import jax
import jax.numpy as jnp
from jax.experimental import pallas as pl
from jax.experimental.pallas import tpu as pltpu

VOCAB_SIZE = 10000
EMBEDDING_DIM = 100      # E (PyTorch embedding_dim)
HIDDEN_DIM = 256         # H
LANE = 128               # TPU lane width; E is padded up to this in HBM
MAX_TILE_N = 512         # max token rows per grid step


def _round_up(x, m):
    return (x + m - 1) // m * m


def _ae_kernel(ids_ref,                         # SMEM: (n_rows,) int32 token ids
               emb_ref,                         # VMEM-resident (vocab, 128) table
               w1_ref, b1_ref, w2_ref, b2_ref,  # VMEM-resident params (padded)
               out_ref,                         # (tile_n, 128) f32 output tile
               buf,                             # VMEM scratch: gathered activations
               *, tile_n, n_valid):
    row0 = pl.program_id(0) * tile_n
    n_rows = jnp.minimum(tile_n, n_valid - row0)   # skip padding rows on last tile

    # Fused embedding gather: dynamic in-VMEM row reads from the lane-padded
    # table (no per-row HBM DMAs, no descriptor issue/wait traffic).
    @pl.loop(0, n_rows)
    def _gather(r):
        tok = ids_ref[row0 + r]                             # SMEM scalar read
        buf[pl.ds(r, 1), :] = emb_ref[pl.ds(tok, 1), :]     # (1, 128) row copy

    # Linear(E,256) -> ReLU -> Linear(256,E) -> Sigmoid, all lane-dense.
    e = buf[...]                                                       # (tile_n, 128)
    h = jnp.dot(e, w1_ref[...], preferred_element_type=jnp.float32) + b1_ref[...]
    h = jnp.maximum(h, 0.0)                                            # ReLU (VPU)
    o = jnp.dot(h, w2_ref[...], preferred_element_type=jnp.float32) + b2_ref[...]
    out_ref[...] = jax.nn.sigmoid(o).astype(out_ref.dtype)             # EUP exp/recip


@jax.jit
def autoencoder_forward(tokens, emb_table, w1, b1, w2, b2):
    """tokens: (B, S) integer ids.  Weights in PyTorch convention:
       w1: (256, 100), b1: (256,), w2: (100, 256), b2: (100,)."""
    B, S = tokens.shape
    V, E = emb_table.shape
    H = w1.shape[0]
    n = B * S

    # Row tile: >= 2 grid steps so both v7x TensorCores get work; capped at 512
    # rows/step; always a multiple of 8 (sublane constraint).
    tile = max(8, min(MAX_TILE_N, _round_up((n + 1) // 2, 8)))
    n_tiles = pl.cdiv(n, tile)
    n_rows = n_tiles * tile

    # Flat token ids, padded with a valid index (0) so every tile is addressable.
    ids = jnp.pad(tokens.reshape(-1).astype(jnp.int32), (0, n_rows - n))

    # Lane-pad the feature dim to 128 in HBM.  Padded W1 rows / W2 cols / b2
    # lanes are zero, so the real output columns are exactly unchanged.
    emb_p = jnp.pad(emb_table.astype(jnp.float32), ((0, 0), (0, LANE - E)))   # (V, 128)
    w1p = jnp.pad(w1.T.astype(jnp.float32), ((0, LANE - E), (0, 0)))          # (128, 256)
    b1p = b1.astype(jnp.float32).reshape(1, H)                                # (1, 256)
    w2p = jnp.pad(w2.T.astype(jnp.float32), ((0, 0), (0, LANE - E)))          # (256, 128)
    b2p = jnp.pad(b2.astype(jnp.float32), (0, LANE - E)).reshape(1, LANE)     # (1, 128)

    kernel = functools.partial(_ae_kernel, tile_n=tile, n_valid=n)

    out = pl.pallas_call(
        kernel,
        out_shape=jax.ShapeDtypeStruct((n_rows, LANE), jnp.float32),
        grid_spec=pltpu.PrefetchScalarGridSpec(
            num_scalar_prefetch=1,                               # token ids -> SMEM
            grid=(n_tiles,),
            in_specs=[
                pl.BlockSpec((V, LANE), lambda i, ids: (0, 0)),   # table, VMEM-resident
                pl.BlockSpec((LANE, H), lambda i, ids: (0, 0)),   # W1^T (padded)
                pl.BlockSpec((1, H), lambda i, ids: (0, 0)),      # b1
                pl.BlockSpec((H, LANE), lambda i, ids: (0, 0)),   # W2^T (padded)
                pl.BlockSpec((1, LANE), lambda i, ids: (0, 0)),   # b2 (padded)
            ],
            out_specs=pl.BlockSpec((tile, LANE), lambda i, ids: (i, 0)),
            scratch_shapes=[
                pltpu.VMEM((tile, LANE), jnp.float32),            # gathered activations
            ],
        ),
        compiler_params=pltpu.CompilerParams(
            dimension_semantics=("parallel",),                    # rows independent
            vmem_limit_bytes=32 * 1024 * 1024,                    # table+weights+tiles ~12 MB
        ),
    )(ids, emb_p, w1p, b1p, w2p, b2p)

    return out[:n, :E].reshape(B, S, E)


def _init_params(key):
    """Deterministic synthetic parameters matching nn.Embedding / nn.Linear shapes."""
    k_emb, k_w1, k_b1, k_w2, k_b2 = jax.random.split(key, 5)
    emb_table = jax.random.normal(k_emb, (VOCAB_SIZE, EMBEDDING_DIM), jnp.float32)
    # nn.Linear(100, 256): weight (256, 100), bias (256,)
    lim1 = 1.0 / jnp.sqrt(EMBEDDING_DIM)
    w1 = jax.random.uniform(k_w1, (HIDDEN_DIM, EMBEDDING_DIM), jnp.float32, -lim1, lim1)
    b1 = jax.random.uniform(k_b1, (HIDDEN_DIM,), jnp.float32, -lim1, lim1)
    # nn.Linear(256, 100): weight (100, 256), bias (100,)
    lim2 = 1.0 / jnp.sqrt(HIDDEN_DIM)
    w2 = jax.random.uniform(k_w2, (EMBEDDING_DIM, HIDDEN_DIM), jnp.float32, -lim2, lim2)
    b2 = jax.random.uniform(k_b2, (EMBEDDING_DIM,), jnp.float32, -lim2, lim2)
    return emb_table, w1, b1, w2, b2


def _reference_forward(tokens, emb_table, w1, b1, w2, b2):
    """Pure-JAX reference for correctness check."""
    e = jnp.take(emb_table, tokens, axis=0)                      # (B, S, E)
    h = jnp.maximum(e @ w1.T + b1, 0.0)
    return jax.nn.sigmoid(h @ w2.T + b2)


if __name__ == "__main__":
    key = jax.random.PRNGKey(0)
    k_params, k_tok = jax.random.split(key)

    emb_table, w1, b1, w2, b2 = _init_params(k_params)

    # Small deterministic token batch: batch=2, seq=8.
    tokens = jax.random.randint(k_tok, (2, 8), 0, VOCAB_SIZE, dtype=jnp.int32)

    out = autoencoder_forward(tokens, emb_table, w1, b1, w2, b2)
    out = jax.block_until_ready(out)

    ref = _reference_forward(tokens, emb_table, w1, b1, w2, b2)
    assert out.shape == (2, 8, EMBEDDING_DIM), out.shape
    assert jnp.allclose(out, ref, atol=1e-5, rtol=1e-5), "mismatch vs JAX reference"

    print("KERNEL_OK")
</pallas_src>

<mosaic_0001>
module attributes {stable_mosaic.version = 11 : i64} {
  func.func @_ae_kernel(%arg0: i32, %arg1: memref<16xi32, #tpu.memory_space<smem>>, %arg2: memref<10000x128xf32, #tpu.memory_space<vmem>>, %arg3: memref<128x256xf32, #tpu.memory_space<vmem>>, %arg4: memref<1x256xf32, #tpu.memory_space<vmem>>, %arg5: memref<256x128xf32, #tpu.memory_space<vmem>>, %arg6: memref<1x128xf32, #tpu.memory_space<vmem>>, %arg7: memref<8x128xf32, #tpu.memory_space<vmem>>, %arg8: memref<8x128xf32, #tpu.memory_space<vmem>>) attributes {dimension_semantics = [#tpu.dimension_semantics<parallel>], iteration_bounds = array<i64: 2>, scalar_prefetch = 1 : i64, scratch_operands = 1 : i64, tpu.core_type = #tpu.core_type<tc>, window_params = [{pipeline_mode = #tpu.pipeline_mode<synchronous>, transform_indices = @transform_0, window_bounds = array<i64: 10000, 128>}, {pipeline_mode = #tpu.pipeline_mode<synchronous>, transform_indices = @transform_1, window_bounds = array<i64: 128, 256>}, {pipeline_mode = #tpu.pipeline_mode<synchronous>, transform_indices = @transform_2, window_bounds = array<i64: 1, 256>}, {pipeline_mode = #tpu.pipeline_mode<synchronous>, transform_indices = @transform_3, window_bounds = array<i64: 256, 128>}, {pipeline_mode = #tpu.pipeline_mode<synchronous>, transform_indices = @transform_4, window_bounds = array<i64: 1, 128>}, {transform_indices = @transform_5, window_bounds = array<i64: 8, 128>}]} {
    %c8_i32 = arith.constant 8 : i32
    %0 = arith.muli %arg0, %c8_i32 : i32
    %c16_i32 = arith.constant 16 : i32
    %1 = arith.subi %c16_i32, %0 : i32
    %c8_i32_0 = arith.constant 8 : i32
    %2 = arith.minsi %c8_i32_0, %1 : i32
    %c0_i32 = arith.constant 0 : i32
    %3 = arith.subi %2, %c0_i32 : i32
    %c1_i32 = arith.constant 1 : i32
    %c1_i32_1 = arith.constant 1 : i32
    %4 = arith.subi %c1_i32, %c1_i32_1 : i32
    %5 = arith.addi %3, %4 : i32
    %c1_i32_2 = arith.constant 1 : i32
    %6 = arith.divsi %5, %c1_i32_2 : i32
    %c1_i32_3 = arith.constant 1 : i32
    %c0_i32_4 = arith.constant 0 : i32
    %c0_i32_5 = arith.constant 0 : i32
    %7 = arith.subi %6, %c0_i32_5 : i32
    %8 = arith.addi %c0_i32_5, %7 : i32
    %c1_i32_6 = arith.constant 1 : i32
    scf.for %arg9 = %c0_i32_5 to %8 step %c1_i32_6  : i32 {
      %28 = arith.muli %arg9, %c1_i32_3 : i32
      %29 = arith.addi %c0_i32_4, %28 : i32
      %30 = arith.addi %0, %29 : i32
      %31 = arith.index_cast %30 : i32 to index
      %32 = memref.load %arg1[%31] : memref<16xi32, #tpu.memory_space<smem>>
      %33 = arith.index_cast %32 : i32 to index
      %c0_21 = arith.constant 0 : index
      %34 = vector.load %arg2[%33, %c0_21] : memref<10000x128xf32, #tpu.memory_space<vmem>>, vector<1x128xf32>
      %35 = arith.index_cast %29 : i32 to index
      %c0_22 = arith.constant 0 : index
      %36 = vector.load %arg8[%35, %c0_22] : memref<8x128xf32, #tpu.memory_space<vmem>>, vector<1x128xf32>
      tpu.vector_store %arg8[%35, %c0_22], %34 {strides = array<i32>} : memref<8x128xf32, #tpu.memory_space<vmem>>, vector<1x128xf32>,
    }
    %c0 = arith.constant 0 : index
    %c0_7 = arith.constant 0 : index
    %9 = vector.load %arg8[%c0, %c0_7] : memref<8x128xf32, #tpu.memory_space<vmem>>, vector<8x128xf32>
    %c0_8 = arith.constant 0 : index
    %c0_9 = arith.constant 0 : index
    %10 = vector.load %arg3[%c0_8, %c0_9] : memref<128x256xf32, #tpu.memory_space<vmem>>, vector<128x256xf32>
    %cst = arith.constant dense<0.000000e+00> : vector<8x256xf32>
    %11 = tpu.matmul %9, %10, %cst {dimension_numbers = #tpu.dot_dimension_numbers<[1], [0], [0], [1], [0, 0, 1, 1], [], []>} : vector<8x128xf32>, vector<128x256xf32>, vector<8x256xf32> -> vector<8x256xf32>
    %c0_10 = arith.constant 0 : index
    %c0_11 = arith.constant 0 : index
    %12 = vector.load %arg4[%c0_10, %c0_11] : memref<1x256xf32, #tpu.memory_space<vmem>>, vector<1x256xf32>
    %13 = vector.broadcast %12 : vector<1x256xf32> to vector<8x256xf32>
    %14 = arith.addf %11, %13 : vector<8x256xf32>
    %cst_12 = arith.constant 0.000000e+00 : f32
    %15 = vector.broadcast %cst_12 : f32 to vector<8x256xf32>
    %16 = arith.maximumf %14, %15 : vector<8x256xf32>
    %c0_13 = arith.constant 0 : index
    %c0_14 = arith.constant 0 : index
    %17 = vector.load %arg5[%c0_13, %c0_14] : memref<256x128xf32, #tpu.memory_space<vmem>>, vector<256x128xf32>
    %cst_15 = arith.constant dense<0.000000e+00> : vector<8x128xf32>
    %18 = tpu.matmul %16, %17, %cst_15 {dimension_numbers = #tpu.dot_dimension_numbers<[1], [0], [0], [1], [0, 0, 1, 1], [], []>} : vector<8x256xf32>, vector<256x128xf32>, vector<8x128xf32> -> vector<8x128xf32>
    %c0_16 = arith.constant 0 : index
    %c0_17 = arith.constant 0 : index
    %19 = vector.load %arg6[%c0_16, %c0_17] : memref<1x128xf32, #tpu.memory_space<vmem>>, vector<1x128xf32>
    %20 = vector.broadcast %19 : vector<1x128xf32> to vector<8x128xf32>
    %21 = arith.addf %18, %20 : vector<8x128xf32>
    %22 = arith.negf %21 : vector<8x128xf32>
    %23 = math.exp %22 : vector<8x128xf32>
    %cst_18 = arith.constant 1.000000e+00 : f32
    %24 = vector.broadcast %cst_18 : f32 to vector<8x128xf32>
    %25 = arith.addf %24, %23 : vector<8x128xf32>
    %26 = arith.divf %24, %25 : vector<8x128xf32>
    %c0_19 = arith.constant 0 : index
    %c0_20 = arith.constant 0 : index
    %27 = vector.load %arg7[%c0_19, %c0_20] : memref<8x128xf32, #tpu.memory_space<vmem>>, vector<8x128xf32>
    tpu.vector_store %arg7[%c0_19, %c0_20], %26 {strides = array<i32>} : memref<8x128xf32, #tpu.memory_space<vmem>>, vector<8x128xf32>,
    return
  }
  func.func @transform_0(%arg0: i32, %arg1: memref<16xi32, #tpu.memory_space<smem>>) -> (i32, i32) {
    %c0_i32 = arith.constant 0 : i32
    %c0_i32_0 = arith.constant 0 : i32
    %c0_i32_1 = arith.constant 0 : i32
    return %c0_i32, %c0_i32_0 : i32, i32
  }
  func.func @transform_1(%arg0: i32, %arg1: memref<16xi32, #tpu.memory_space<smem>>) -> (i32, i32) {
    %c0_i32 = arith.constant 0 : i32
    %c0_i32_0 = arith.constant 0 : i32
    %c0_i32_1 = arith.constant 0 : i32
    return %c0_i32, %c0_i32_0 : i32, i32
  }
  func.func @transform_2(%arg0: i32, %arg1: memref<16xi32, #tpu.memory_space<smem>>) -> (i32, i32) {
    %c0_i32 = arith.constant 0 : i32
    %c0_i32_0 = arith.constant 0 : i32
    %c0_i32_1 = arith.constant 0 : i32
    return %c0_i32, %c0_i32_0 : i32, i32
  }
  func.func @transform_3(%arg0: i32, %arg1: memref<16xi32, #tpu.memory_space<smem>>) -> (i32, i32) {
    %c0_i32 = arith.constant 0 : i32
    %c0_i32_0 = arith.constant 0 : i32
    %c0_i32_1 = arith.constant 0 : i32
    return %c0_i32, %c0_i32_0 : i32, i32
  }
  func.func @transform_4(%arg0: i32, %arg1: memref<16xi32, #tpu.memory_space<smem>>) -> (i32, i32) {
    %c0_i32 = arith.constant 0 : i32
    %c0_i32_0 = arith.constant 0 : i32
    %c0_i32_1 = arith.constant 0 : i32
    return %c0_i32, %c0_i32_0 : i32, i32
  }
  func.func @transform_5(%arg0: i32, %arg1: memref<16xi32, #tpu.memory_space<smem>>) -> (i32, i32) {
    %c0_i32 = arith.constant 0 : i32
    %c0_i32_0 = arith.constant 0 : i32
    return %arg0, %c0_i32 : i32, i32
  }
}

</mosaic_0001>

<bundles_post_ra>
// kernel: autoencoder_forward.1
= control target key start
LH: loop header
LB: loop body
LE: loop exit
PB: predicated region body
PF: predicated region fallthrough
CT: control target
= control target key end

     0   :  { %s931_s0 = inlined_call_operand.vmem [shape: s32[16], index: 0, kind: input, shape index: {}]   ;;  %s932_s1 = inlined_call_operand.vmem [shape: f32[10000,128], index: 1, kind: input, shape index: {}]   ;;  %s933_s2 = inlined_call_operand.vmem [shape: f32[128,256], index: 2, kind: input, shape index: {}]   ;;  %s934_s3 = inlined_call_operand.vmem [shape: f32[1,256], index: 3, kind: input, shape index: {}]   ;;  %s935_s4 = inlined_call_operand.vmem [shape: f32[256,128], index: 4, kind: input, shape index: {}]   ;;  %s936_s5 = inlined_call_operand.vmem [shape: f32[1,128], index: 5, kind: input, shape index: {}]   ;;  %s937_s6 = inlined_call_operand.vmem [shape: f32[16,128], index: 6, kind: output, shape index: {}]  }
   0x1   :  { %s11_s23 = sshll.u32 %s931_s0, 4  ;;  %s12_s23 = int_to_ptr.vmem [resolvable:$true] %s11_s23 }
   0x2   :  { %s643_s24 = scalar_lea.vmem %s12_s23, 16  ;;  %p648_p1 = scmp.lt.s32.totalorder %s12_s23, %s12_s23 }
   0x3   :  { %p644_p0 = scmp.ne.s32.totalorder %s12_s23, %s643_s24  ;;  %p649_p2 = scmp.lt.s32.totalorder %s643_s24, %s643_s24 }
   0x5   :  { %p650_p3 = por %p649_p2, %p648_p1 }
   0x7   :  { %p651_p4 = pnand %p650_p3, %p644_p0 }
   0x9   :  { %654 = shalt.err (!%p651_p4)  }
   0xa   :  { %s673_s25 = smov [#allocation4]  }
   0xb   :  { %14 = dma.vmem_to_smem %s12_s23, 16, %s673_s25, [#allocation3] }
   0xc   :  { %663 = dma.done.wait [#allocation3], 16 }
   0xd   :  { %664 = vsyncadd [#allocation3], 4294967280 }
   0xe   :  { %16 = sfence }
   0xf   :  { %s713_s26 = smov 0  }
  0x10 LB: > { %s508_s0 = sadd.s32 4294967295, %s667_s26   ;;  %p511_p5 = scmp.ge.s32.totalorder %s667_s26, 1  ;;  %s667_s26 = sphi %s713_s26, %s22_s26  }
  0x11   : > { %p184_p6 = scmp.lt.s32.totalorder %s667_s26, 3 }
  0x13   : > { %p185_p7 = pnand %p511_p5, %p184_p6 }
  0x14   : > { %p206_p8 = scmp.lt.s32.totalorder (!%p185_p7), %s508_s0, 1  ;;  %s513_s27 = sshll.u32 (!%p185_p7), %s508_s0, 3 }
  0x15   : > { %188 = sbr.rel (%p185_p7) target bundleno = 543 (0x21f), region = 40  ;;  %s211_s28 = ssub.s32 (!%p185_p7), 16, %s513_s27 }
  0x16   : > { %p212_p9 = scmp.lt.s32.totalorder (!%p185_p7), %s211_s28, 8  ;;  %p519_p10 = scmp.le.s32.totalorder (!%p185_p7), %s211_s28, 0 }
  0x1c   : > { %s939_s0 = smov (!%p206_p8, %s508_s0), 1  ;;  %491 = sbr.rel (%p519_p10) target bundleno = 46 (0x2e), region = 70 }
  0x1d   : > { %s512_s29 = sshll.u32 %s939_s0, 3  ;;  %s669_s10 = smov (!%p519_p10), 0  }
  0x1e   : > { %s724_s8 = scalar_lea.vmem %s937_s6, %s512_s29 }
  0x1f   : > { %s213_s9 = scalar_select %p212_p9, %s211_s28, 8 }
  0x23 LB: >> { %s220_s11 = sadd.s32 %s671_s10, %s513_s27  ;;  %s224_s16 = scalar_lea.vmem [#allocation2], %s671_s10  ;;  %s671_s10 = sphi %s669_s10, %s217_s10  }
  0x24   : >> { %s221_s12 = sld [smem:[#allocation4 + %s220_s11]]  ;;  %s217_s10 = sadd.s32 1, %s671_s10  }
  0x25   : >> { %p216_p11 = scmp.ge.s32.totalorder %s217_s10, %s213_s9 }
  0x27   : > { %219 = sbr.rel (!%p216_p11) target bundleno = 35 (0x23), region = 76 }
  0x2a   : >> { %s222_s15 = scalar_lea.vmem %s932_s1, %s221_s12 }
  0x2b   : >> { %v223_v0 = vld [vmem:[%s222_s15] sm:$0x1] }
  0x2c   : >> { %225 = vst [vmem:[%s224_s16] sm:$0x1] %v223_v0 }
  0x2e PF: > { %v228_v1 = vld [vmem:[%s933_s2 + $0x8] sm:$0xff]  ;;  %v230_v2 = vld [vmem:[%s933_s2 + $0x18] sm:$0xff]  ;;  %v227_v3 = vld [vmem:[%s933_s2] sm:$0xff]  ;;  %v674_v8 = vmov 0.0  }
  0x2f   : > { %v557_v4 = vpack.c.bf16 %v230_v2, %v228_v1  ;;  %v229_v5 = vld [vmem:[%s933_s2 + $0x10] sm:$0xff]  ;;  %v232_v6 = vld [vmem:[%s933_s2 + $0x28] sm:$0xff]  ;;  %v234_v7 = vld [vmem:[%s933_s2 + $0x38] sm:$0xff]  ;;  %335 = vmatprep.mubr.f32.mxu0 %v674_v8 }
  0x30   : > { %v559_v9 = vpack.c.bf16 %v229_v5, %v227_v3  ;;  %v561_v10 = vpack.c.bf16 %v234_v7, %v232_v6  ;;  %v231_v11 = vld [vmem:[%s933_s2 + $0x20] sm:$0xff]  ;;  %v233_v12 = vld [vmem:[%s933_s2 + $0x30] sm:$0xff]  ;;  %v236_v13 = vld [vmem:[%s933_s2 + $0x48] sm:$0xff] }
  0x31   : > { %558 = vmatprep.subr.bf16.mxu0 %v557_v4  ;;  %v238_v14 = vld [vmem:[%s933_s2 + $0x58] sm:$0xff]  ;;  %v563_v15 = vpack.c.bf16 %v233_v12, %v231_v11  ;;  %v235_v17 = vld [vmem:[%s933_s2 + $0x40] sm:$0xff]  ;;  %v237_v18 = vld [vmem:[%s933_s2 + $0x50] sm:$0xff] }
  0x32   : > { %560 = vmatpush1.bf16.msra.mxu0 %v559_v9  ;;  %v565_v16 = vpack.c.bf16 %v238_v14, %v236_v13  ;;  %v240_v19 = vld [vmem:[%s933_s2 + $0x68] sm:$0xff]  ;;  %v242_v20 = vld [vmem:[%s933_s2 + $0x78] sm:$0xff]  ;;  %v567_v21 = vpack.c.bf16 %v237_v18, %v235_v17  ;;  %v239_v23 = vld [vmem:[%s933_s2 + $0x60] sm:$0xff] }
  0x33   : > { %562 = vmatprep.subr.bf16.mxu0 %v561_v10  ;;  %v569_v22 = vpack.c.bf16 %v242_v20, %v240_v19  ;;  %v241_v24 = vld [vmem:[%s933_s2 + $0x70] sm:$0xff]  ;;  %v244_v25 = vld [vmem:[%s933_s2 + $0x88] sm:$0xff]  ;;  %v246_v26 = vld [vmem:[%s933_s2 + $0x98] sm:$0xff] }
  0x34   : > { %v243_v27 = vld [vmem:[%s933_s2 + $0x80] sm:$0xff]  ;;  %v245_v28 = vld [vmem:[%s933_s2 + $0x90] sm:$0xff]  ;;  %v361_v30 = vld [vmem:[%s935_s4 + $0x88] sm:$0xff]  ;;  %v571_v32 = vpack.c.bf16 %v241_v24, %v239_v23  ;;  %v573_v37 = vpack.c.bf16 %v246_v26, %v244_v25 }
  0x35   : > { %v360_v29 = vld [vmem:[%s935_s4 + $0x80] sm:$0xff]  ;;  %v345_v34 = vld [vmem:[%s935_s4 + $0x8] sm:$0xff]  ;;  %v362_v35 = vld [vmem:[%s935_s4 + $0x90] sm:$0xff]  ;;  %v575_v47 = vpack.c.bf16 %v245_v28, %v243_v27 }
  0x36   : > { %564 = vmatpush1.bf16.msra.mxu0 %v563_v15  ;;  %v344_v31 = vld [vmem:[%s935_s4] sm:$0xff]  ;;  %v589_v33 = vpack.c.bf16 %v361_v30, %v360_v29  ;;  %v363_v36 = vld [vmem:[%s935_s4 + $0x98] sm:$0xff]  ;;  %v346_v40 = vld [vmem:[%s935_s4 + $0x10] sm:$0xff] }
  0x37   : > { %566 = vmatprep.subr.bf16.mxu0 %v565_v16  ;;  %v591_v38 = vpack.c.bf16 %v345_v34, %v344_v31  ;;  %v593_v39 = vpack.c.bf16 %v363_v36, %v362_v35  ;;  %v347_v41 = vld [vmem:[%s935_s4 + $0x18] sm:$0xff]  ;;  %v364_v42 = vld [vmem:[%s935_s4 + $0xa0] sm:$0xff]  ;;  %v248_v43 = vld [vmem:[%s933_s2 + $0xa8] sm:$0xff]  ;;  %v261_v35 = vlaneseq }
  0x38   : > { %v250_v44 = vld [vmem:[%s933_s2 + $0xb8] sm:$0xff]  ;;  %590 = vmatprep.subr.bf16.mxu1 %v589_v33  ;;  %v365_v45 = vld [vmem:[%s935_s4 + $0xa8] sm:$0xff]  ;;  %v595_v46 = vpack.c.bf16 %v347_v41, %v346_v40  ;;  %v247_v48 = vld [vmem:[%s933_s2 + $0xa0] sm:$0xff] }
  0x39   : > { %592 = vmatpush3.bf16.msra.mxu1 %v591_v38  ;;  %v597_v49 = vpack.c.bf16 %v365_v45, %v364_v42  ;;  %v348_v50 = vld [vmem:[%s935_s4 + $0x20] sm:$0xff]  ;;  %v349_v51 = vld [vmem:[%s935_s4 + $0x28] sm:$0xff]  ;;  %v577_v52 = vpack.c.bf16 %v250_v44, %v248_v43  ;;  %v249_v53 = vld [vmem:[%s933_s2 + $0xb0] sm:$0xff]  ;;  %v262_v36 = vshrl.u32 %v261_v35, 7 }
  0x3a   : > { %568 = vmatpush1.bf16.msra.mxu0 %v567_v21  ;;  %594 = vmatprep.subr.bf16.mxu1 %v593_v39  ;;  %v366_v54 = vld [vmem:[%s935_s4 + $0xb0] sm:$0xff]  ;;  %v367_v55 = vld [vmem:[%s935_s4 + $0xb8] sm:$0xff]  ;;  %v252_v56 = vld [vmem:[%s933_s2 + $0xc8] sm:$0xff]  ;;  %v599_v58 = vpack.c.bf16 %v349_v51, %v348_v50  ;;  %v579_v59 = vpack.c.bf16 %v249_v53, %v247_v48 }
  0x3b   : > { %570 = vmatprep.subr.bf16.mxu0 %v569_v22  ;;  %v254_v57 = vld [vmem:[%s933_s2 + $0xd8] sm:$0xff]  ;;  %v251_v60 = vld [vmem:[%s933_s2 + $0xc0] sm:$0xff]  ;;  %v601_v61 = vpack.c.bf16 %v367_v55, %v366_v54  ;;  %v350_v62 = vld [vmem:[%s935_s4 + $0x30] sm:$0xff]  ;;  %v267_v39 = vsub.s32 1, %v262_v36 }
  0x3c   : > { %v351_v63 = vld [vmem:[%s935_s4 + $0x38] sm:$0xff]  ;;  %v581_v0 = vpack.c.bf16 %v254_v57, %v252_v56  ;;  %v253_v1 = vld [vmem:[%s933_s2 + $0xd0] sm:$0xff]  ;;  %v368_v2 = vld [vmem:[%s935_s4 + $0xc0] sm:$0xff] }
  0x3d   : > { %596 = vmatpush3.bf16.msra.mxu1 %v595_v46  ;;  %v369_v3 = vld [vmem:[%s935_s4 + $0xc8] sm:$0xff]  ;;  %v258_v5 = vld [vmem:[%s933_s2 + $0xf8] sm:$0xff]  ;;  %v603_v6 = vpack.c.bf16 %v351_v63, %v350_v62  ;;  %v583_v7 = vpack.c.bf16 %v253_v1, %v251_v60  ;;  %v255_v8 = vld [vmem:[%s933_s2 + $0xe0] sm:$0xff] }
  0x3e   : > { %572 = vmatpush1.bf16.msra.mxu0 %v571_v32  ;;  %598 = vmatprep.subr.bf16.mxu1 %v597_v49  ;;  %v256_v4 = vld [vmem:[%s933_s2 + $0xe8] sm:$0xff]  ;;  %v605_v9 = vpack.c.bf16 %v369_v3, %v368_v2  ;;  %v352_v10 = vld [vmem:[%s935_s4 + $0x40] sm:$0xff]  ;;  %v257_v13 = vld [vmem:[%s933_s2 + $0xf0] sm:$0xff] }
  0x3f   : > { %574 = vmatprep.subr.bf16.mxu0 %v573_v37  ;;  %v353_v11 = vld [vmem:[%s935_s4 + $0x48] sm:$0xff]  ;;  %v585_v12 = vpack.c.bf16 %v258_v5, %v256_v4  ;;  %v370_v14 = vld [vmem:[%s935_s4 + $0xd0] sm:$0xff]  ;;  %v371_v15 = vld [vmem:[%s935_s4 + $0xd8] sm:$0xff]  ;;  %v587_v17 = vpack.c.bf16 %v257_v13, %v255_v8  ;;  %v263_v37 = vsub.s32 0, %v262_v36 }
  0x40   : > { %v607_v16 = vpack.c.bf16 %v353_v11, %v352_v10  ;;  %v609_v18 = vpack.c.bf16 %v371_v15, %v370_v14  ;;  %v354_v19 = vld [vmem:[%s935_s4 + $0x50] sm:$0xff]  ;;  %v355_v20 = vld [vmem:[%s935_s4 + $0x58] sm:$0xff]  ;;  %v372_v21 = vld [vmem:[%s935_s4 + $0xe0] sm:$0xff] }
  0x41   : > { %600 = vmatpush3.bf16.msra.mxu1 %v599_v58  ;;  %v373_v22 = vld [vmem:[%s935_s4 + $0xe8] sm:$0xff]  ;;  %v611_v23 = vpack.c.bf16 %v355_v20, %v354_v19  ;;  %v226_v24 = vld [vmem:[#allocation2] sm:$0xff]  ;;  %v374_v29 = vld [vmem:[%s935_s4 + $0xf0] sm:$0xff] }
  0x42   : > { %576 = vmatpush1.bf16.msra.mxu0 %v575_v47  ;;  %602 = vmatprep.subr.bf16.mxu1 %v601_v61  ;;  %v613_v25 = vpack.c.bf16 %v373_v22, %v372_v21  ;;  %v356_v26 = vld [vmem:[%s935_s4 + $0x60] sm:$0xff]  ;;  %v357_v27 = vld [vmem:[%s935_s4 + $0x68] sm:$0xff]  ;;  %v375_v30 = vld [vmem:[%s935_s4 + $0xf8] sm:$0xff] }
  0x43   : > { %578 = vmatprep.subr.bf16.mxu0 %v577_v52  ;;  %v615_v28 = vpack.c.bf16 %v357_v27, %v356_v26  ;;  %v617_v31 = vpack.c.bf16 %v375_v30, %v374_v29  ;;  %v358_v32 = vld [vmem:[%s935_s4 + $0x70] sm:$0xff]  ;;  %v359_v33 = vld [vmem:[%s935_s4 + $0x78] sm:$0xff]  ;;  %v259_v38 = vld [vmem:[%s934_s3] sm:$0x3] }
  0x44   : > { %v619_v34 = vpack.c.bf16 %v359_v33, %v358_v32  ;;  %v264_v40 = vrot.slane %v259_v38, %v263_v37  ;;  %v268_v41 = vrot.slane %v259_v38, %v267_v39  ;;  %v515_v49 = vld [vmem:[%s936_s5] ss:$0 sm:$0xff] }
  0x45   : > { %604 = vmatpush3.bf16.msra.mxu1 %v603_v6 }
  0x46   : > { %580 = vmatpush1.bf16.msra.mxu0 %v579_v59  ;;  %606 = vmatprep.subr.bf16.mxu1 %v605_v9 }
  0x47   : > { %582 = vmatprep.subr.bf16.mxu0 %v581_v0 }
  0x49   : > { %608 = vmatpush3.bf16.msra.mxu1 %v607_v16 }
  0x4a   : > { %584 = vmatpush1.bf16.msra.mxu0 %v583_v7  ;;  %610 = vmatprep.subr.bf16.mxu1 %v609_v18 }
  0x4b   : > { %586 = vmatprep.subr.bf16.mxu0 %v585_v12 }
  0x4d   : > { %612 = vmatpush3.bf16.msra.mxu1 %v611_v23 }
  0x4e   : > { %588 = vmatpush1.bf16.msra.mxu0 %v587_v17  ;;  %614 = vmatprep.subr.bf16.mxu1 %v613_v25 }
  0x51   : > { %336 = vmatmul.mubr.f32.vlgmr.msra.gmra.mrb[0].mxu0 %v226_v24  ;;  %616 = vmatpush3.bf16.msra.mxu1 %v615_v28 }
  0x52   : > { %618 = vmatprep.subr.bf16.mxu1 %v617_v31 }
  0x55   : > { %620 = vmatpush3.bf16.msra.mxu1 %v619_v34 }
 0x124   : > { %v337_v42 = vpop.f32.mrb[0].mxu0 }
 0x125   : > { %v338_v43 = vadd.f32 %v337_v42, %v264_v40  ;;  %v339_v44 = vpop.f32.mrb[1].mxu0 }
 0x126   : > { %v340_v45 = vadd.f32 %v339_v44, %v268_v41 }
 0x127   : > { %v342_v47 = vmax.f32 %v338_v43, 0.0 }
 0x128   : > { %v343_v46 = vmax.f32 %v340_v45, 0.0 }
 0x12a   : > { %447 = vmatprep.mubr.f32.mxu1 %v343_v46 }
 0x12b   : > { %448 = vmatmul.mubr.f32.vlgmr.msra.gmra.mrb[0].mxu1 %v342_v47 }
 0x1fe   : > { %v554_v48 = vpop.f32.mrb[0].mxu1 }
 0x1ff   : > { %v555_v50 = vpop.f32.mrb[1].mxu1 }
 0x200   : > { %v556_v51 = vadd.f32 %v555_v50, %v554_v48 }
 0x202   : > { %v450_v52 = vadd.f32 %v556_v51, %v515_v49 }
 0x204   : > { %v516_v53 = vmul.f32 -1.442695, %v450_v52 }
 0x206   : > { %639 = vpow2.f32 %v516_v53 }
 0x210   : > { %v640_v54 = vpop.eup %639 }
 0x211   : > { %v456_v55 = vadd.f32 1.0, %v640_v54 }
 0x213   : > { %641 = vrcp.f32 %v456_v55 }
 0x21d   : > { %v642_v56 = vpop.eup %641 }
 0x21e   : > { %459 = vst [vmem:[%s724_s8] sm:$0xff] %v642_v56 }
 0x21f PF: > { %s22_s26 = sadd.s32 1, %s667_s26  }
 0x220   : > { %p19_p12 = scmp.ge.s32.totalorder %s22_s26, 4  }
 0x222   :  { %21 = sbr.rel (!%p19_p12) target bundleno = 16 (0x10), region = 87 }

</bundles_post_ra>
